<compile_context>
chip_gen: v7x
topology: tpu7x:2x2x1
jax: 0.10.0
libtpu: 0.0.40
codegen_flags: <defaults>
</compile_context>

<pallas_src>
import functools

import jax
import jax.numpy as jnp
from jax import lax
from jax.experimental import pallas as pl
from jax.experimental.pallas import tpu as pltpu

# ---------------- global knobs ----------------
_VMEM_LIMIT = 32 * 1024 * 1024       # scoped VMEM: safe on v5e/v6e/v7x
_VMEM_BUDGET = 12 * 1024 * 1024      # target double-buffered GEMM working set
_IN_PLANE_BUDGET = 4 * 1024 * 1024   # f32 bytes of one (HW, ct) plane before chunking

DOWN_CH = [(3, 32), (32, 64), (64, 128), (128, 256)]
NUM_RES = 6
RES_CH = 256
UP_CH = [(256, 128), (128, 64), (64, 32), (32, 16)]


def _round_up(x, m):
    return (x + m - 1) // m * m


# ------------------------------------------------------------------
# Fused GEMM kernel: C = A @ B + bias (+ optional tanh)
#   bf16 MXU operands, f32 accumulator, bias/activation fused in the epilogue
# ------------------------------------------------------------------

def _gemm_bias_kernel(a_ref, b_ref, bias_ref, o_ref, *, activation):
    acc = jnp.dot(a_ref[...], b_ref[...], preferred_element_type=jnp.float32)
    acc = acc + bias_ref[...]                      # (1, tn) broadcasts over rows
    if activation == "tanh":
        acc = jnp.tanh(acc)
    o_ref[...] = acc.astype(o_ref.dtype)


def _choose_tiles(M, K, N, out_bytes):
    """tn fills the 256-wide MXU when possible; tm grows to a VMEM budget."""
    if N % 256 == 0:
        tn = 256
    elif N % 128 == 0:
        tn = 128
    else:
        tn = N  # small-Cout layers; full-dim block is legal (see TODO below)

    def wset(tm_, tn_):  # double-buffered A + B + bias + out
        return 2 * (tm_ * K * 2 + K * tn_ * 2 + 4 * tn_ + tm_ * tn_ * out_bytes)

    tm = 8
    for cand in (2048, 1024, 512, 256, 128, 64, 32, 16, 8):
        if wset(cand, tn) <= _VMEM_BUDGET:
            tm = cand
            break
    tm = min(tm, _round_up(M, 8))
    # Bottleneck-resolution GEMMs (whole M in one tile): collapse the N grid too
    # so the GEMM is a single grid step (avoids drain/overhead-bound MXU calls).
    if tm >= M and tn < N and wset(tm, N) <= _VMEM_BUDGET:
        tn = N
    return tm, tn


def fused_matmul_bias(a, b, bias2, activation="none", out_dtype=jnp.bfloat16):
    """C = A @ B + bias[None, :], optional fused tanh.  A bf16 (M,K), B bf16
    (K,N), bias2 f32 (1,N).  K is kept whole per block (max K here is 2304)."""
    M, K = a.shape
    K2, N = b.shape
    assert K == K2 and bias2.shape == (1, N)
    out_bytes = jnp.dtype(out_dtype).itemsize
    tm, tn = _choose_tiles(M, K, N, out_bytes)
    Mp = _round_up(M, tm)
    if Mp != M:
        a = jnp.pad(a, ((0, Mp - M), (0, 0)))
    grid = (Mp // tm, N // tn)

    out = pl.pallas_call(
        functools.partial(_gemm_bias_kernel, activation=activation),
        out_shape=jax.ShapeDtypeStruct((Mp, N), out_dtype),
        grid=grid,
        in_specs=[pl.BlockSpec((tm, K), lambda i, j: (i, 0)),
                  pl.BlockSpec((K, tn), lambda i, j: (0, j)),
                  pl.BlockSpec((1, tn), lambda i, j: (0, j))],
        out_specs=pl.BlockSpec((tm, tn), lambda i, j: (i, j)),
        compiler_params=pltpu.CompilerParams(
            dimension_semantics=("parallel", "parallel"),
            vmem_limit_bytes=_VMEM_LIMIT),
    )(a, b, bias2)
    return out[:M] if Mp != M else out


# ------------------------------------------------------------------
# Conv glue: bf16 im2col -> fused Pallas GEMM
# ------------------------------------------------------------------

def conv2d(x, wg, bias2, cout, kh, kw, stride, pad, activation="none"):
    """NHWC conv as one fused Pallas GEMM.
    x: (N,H,W,Cin); wg: (kh*kw*Cin, Np) bf16 GEMM weight, Np may be zero-padded
    past `cout` for lane-dense stores; bias2: (1, Np) f32."""
    x = x.astype(jnp.bfloat16)                      # bf16 BEFORE pad / im2col
    N_, H, W_, Cin = x.shape
    xp = jnp.pad(x, ((0, 0), (pad, pad), (pad, pad), (0, 0)))
    Ho = (H + 2 * pad - kh) // stride + 1
    Wo = (W_ + 2 * pad - kw) // stride + 1
    # TODO(synk): for large images, fuse im2col into the GEMM kernel with a
    # manual-DMA (pl.ANY) row-window pipeline to avoid materializing the
    # kh*kw-inflated patch buffer in HBM.
    cols = [xp[:, i:i + (Ho - 1) * stride + 1:stride,
               j:j + (Wo - 1) * stride + 1:stride, :]
            for i in range(kh) for j in range(kw)]
    a = jnp.concatenate(cols, axis=-1).reshape(N_ * Ho * Wo, kh * kw * Cin)
    out = fused_matmul_bias(a, wg, bias2, activation)          # (M, Np) bf16
    if out.shape[1] != cout:
        out = out[:, :cout]                                    # drop padded lanes
    return out.reshape(N_, Ho, Wo, cout)


def conv_transpose2d(x, wg_fused, bias2, cout):
    """ConvTranspose2d(kernel=4, stride=2, padding=1) as ONE stride-1 3x3 GEMM:
    the four 2x2 sub-pixel kernels are embedded (zero-filled) into a 3x3 kernel
    and stacked along the output-channel axis (N = 4*cout, lane dense); the
    result is pixel-shuffled to the 2x-larger output."""
    N_, H, W_, _ = x.shape
    y = conv2d(x, wg_fused, bias2, 4 * cout, 3, 3, stride=1, pad=1)
    y = y.reshape(N_, H, W_, 2, 2, cout)            # (..., row-phase, col-phase, C)
    y = jnp.transpose(y, (0, 1, 3, 2, 4, 5)).reshape(N_, 2 * H, 2 * W_, cout)
    return y


# ------------------------------------------------------------------
# Fused InstanceNorm2d (+ LeakyReLU  OR  + residual add), NHWC lane-dense
# ------------------------------------------------------------------

def _in_fused_kernel(*refs, eps, alpha, inv_hw, has_residual):
    if has_residual:
        x_ref, r_ref, g_ref, b_ref, o_ref = refs
    else:
        x_ref, g_ref, b_ref, o_ref = refs
        r_ref = None
    x = x_ref[0].astype(jnp.float32)                         # (HW, ct)
    s = jnp.sum(x, axis=0, keepdims=True)                    # one traversal:
    ss = jnp.sum(x * x, axis=0, keepdims=True)               # sum + sum-of-squares
    mean = s * inv_hw
    var = ss * inv_hw - mean * mean
    y = (x - mean) * lax.rsqrt(var + eps)
    y = y * g_ref[...] + b_ref[...]
    if has_residual:
        y = y + r_ref[0].astype(jnp.float32)                 # IN + skip-add fused
    else:
        y = jnp.maximum(y, alpha * y)                        # LeakyReLU(alpha)
    o_ref[0] = y.astype(o_ref.dtype)


def _in_stats_kernel(x_ref, mean_ref, rstd_ref, *, eps, inv_hw):
    k = pl.program_id(2)

    @pl.when(k == 0)
    def _():
        mean_ref[...] = jnp.zeros_like(mean_ref)
        rstd_ref[...] = jnp.zeros_like(rstd_ref)

    x = x_ref[0].astype(jnp.float32)                         # (chunk, ct)
    mean_ref[...] += jnp.sum(x, axis=0)[None, None, :]       # running sum
    rstd_ref[...] += jnp.sum(x * x, axis=0)[None, None, :]   # running sum of squares

    @pl.when(k == pl.num_programs(2) - 1)
    def _():
        m = mean_ref[...] * inv_hw
        var = rstd_ref[...] * inv_hw - m * m
        mean_ref[...] = m
        rstd_ref[...] = lax.rsqrt(var + eps)


def _in_apply_kernel(*refs, alpha, has_residual):
    if has_residual:
        x_ref, r_ref, mean_ref, rstd_ref, g_ref, b_ref, o_ref = refs
    else:
        x_ref, mean_ref, rstd_ref, g_ref, b_ref, o_ref = refs
        r_ref = None
    x = x_ref[0].astype(jnp.float32)                         # (chunk, ct)
    y = (x - mean_ref[0]) * rstd_ref[0]
    y = y * g_ref[...] + b_ref[...]
    if has_residual:
        y = y + r_ref[0].astype(jnp.float32)
    else:
        y = jnp.maximum(y, alpha * y)
    o_ref[0] = y.astype(o_ref.dtype)


def _pick_hw_chunk(HW, ct):
    budget_elems = _IN_PLANE_BUDGET // 4
    for nchunks in range(2, min(HW // 8, 4096) + 1):
        if HW % nchunks:
            continue
        chunk = HW // nchunks
        if chunk % 8 == 0 and chunk * ct <= budget_elems:
            return chunk
    return None


def _instance_norm_fused(x3, r3, g2, b2, alpha, eps, inv_hw, ct):
    N, HW, C = x3.shape
    grid = (N, C // ct)
    x_spec = pl.BlockSpec((1, HW, ct), lambda n, c: (n, 0, c))
    v_spec = pl.BlockSpec((1, ct), lambda n, c: (0, c))
    has_res = r3 is not None
    in_specs = [x_spec] + ([x_spec] if has_res else []) + [v_spec, v_spec]
    args = (x3,) + ((r3,) if has_res else ()) + (g2, b2)
    return pl.pallas_call(
        functools.partial(_in_fused_kernel, eps=eps, alpha=alpha,
                          inv_hw=inv_hw, has_residual=has_res),
        out_shape=jax.ShapeDtypeStruct((N, HW, C), jnp.bfloat16),
        grid=grid, in_specs=in_specs, out_specs=x_spec,
        compiler_params=pltpu.CompilerParams(
            dimension_semantics=("parallel", "parallel"),
            vmem_limit_bytes=_VMEM_LIMIT),
    )(*args)


def _instance_norm_chunked(x3, r3, g2, b2, alpha, eps, inv_hw, ct, chunk):
    """Two-pass HW-chunked InstanceNorm (VMEM-bounded for v7x at real sizes)."""
    N, HW, C = x3.shape
    nk = HW // chunk
    grid = (N, C // ct, nk)
    x_spec = pl.BlockSpec((1, chunk, ct), lambda n, c, k: (n, k, c))
    s_spec = pl.BlockSpec((1, 1, ct), lambda n, c, k: (n, 0, c))
    v_spec = pl.BlockSpec((1, ct), lambda n, c, k: (0, c))
    cp = pltpu.CompilerParams(
        dimension_semantics=("parallel", "parallel", "arbitrary"),
        vmem_limit_bytes=_VMEM_LIMIT)

    mean, rstd = pl.pallas_call(
        functools.partial(_in_stats_kernel, eps=eps, inv_hw=inv_hw),
        out_shape=(jax.ShapeDtypeStruct((N, 1, C), jnp.float32),
                   jax.ShapeDtypeStruct((N, 1, C), jnp.float32)),
        grid=grid, in_specs=[x_spec], out_specs=(s_spec, s_spec),
        compiler_params=cp,
    )(x3)

    has_res = r3 is not None
    in_specs = ([x_spec] + ([x_spec] if has_res else [])
                + [s_spec, s_spec, v_spec, v_spec])
    args = (x3,) + ((r3,) if has_res else ()) + (mean, rstd, g2, b2)
    return pl.pallas_call(
        functools.partial(_in_apply_kernel, alpha=alpha, has_residual=has_res),
        out_shape=jax.ShapeDtypeStruct((N, HW, C), jnp.bfloat16),
        grid=grid, in_specs=in_specs, out_specs=x_spec,
        compiler_params=cp,
    )(*args)


def instance_norm_act(x, gamma2, beta2, alpha=0.0, residual=None, eps=1e-5,
                      hw_chunk=None):
    """InstanceNorm2d fused with LeakyReLU(alpha), or with a residual add.
    NHWC (channels on the lane axis); bf16 in/out, f32 statistics."""
    N, H, W_, C = x.shape
    HW = H * W_
    ct = 128 if C % 128 == 0 else C
    x3 = x.reshape(N, HW, C)
    r3 = residual.reshape(N, HW, C) if residual is not None else None
    inv_hw = 1.0 / float(HW)
    if hw_chunk is None and HW * ct * 4 > _IN_PLANE_BUDGET:
        hw_chunk = _pick_hw_chunk(HW, ct)
    if (hw_chunk is not None and hw_chunk < HW and HW % hw_chunk == 0
            and hw_chunk % 8 == 0):
        out = _instance_norm_chunked(x3, r3, gamma2, beta2, alpha, eps,
                                     inv_hw, ct, hw_chunk)
    else:
        out = _instance_norm_fused(x3, r3, gamma2, beta2, alpha, eps, inv_hw, ct)
    return out.reshape(N, H, W_, C)


# ------------------------------------------------------------------
# Weight preparation (done ONCE at init: GEMM layout, bf16, lane padding)
# ------------------------------------------------------------------

def _to_gemm_weight(w_torch, pad_to=None):
    """(Cout, Cin, kh, kw) torch layout -> (kh*kw*Cin, Np) bf16 GEMM weight."""
    cout, cin, kh, kw = w_torch.shape
    wg = jnp.transpose(w_torch, (2, 3, 1, 0)).reshape(kh * kw * cin, cout)
    if pad_to is not None and cout < pad_to:
        wg = jnp.pad(wg, ((0, 0), (0, pad_to - cout)))
    return wg.astype(jnp.bfloat16)


def _to_bias2(b, pad_to=None):
    cout = b.shape[0]
    if pad_to is not None and cout < pad_to:
        b = jnp.pad(b, (0, pad_to - cout))
    return b.astype(jnp.float32).reshape(1, -1)


# (a, dy) -> ky  (and identically (c, dx) -> kx) for the 3x3 embedding of the
# ConvTranspose2d(4,2,1) sub-pixel decomposition (y = 2i - 1 + ky).
_KMAP = {(0, 0): 3, (0, 1): 1, (1, 1): 2, (1, 2): 0}


def _fuse_convT_weight(wt):
    """(Cin, Cout, 4, 4) ConvTranspose2d(4,2,1) weight -> equivalent fused
    stride-1 3x3 conv weight (4*Cout, Cin, 3, 3) in torch Conv2d layout.
    Output channel (a*2 + c)*Cout + co produces the (row-phase a, col-phase c)
    sub-pixel output; zero taps fill the unused positions."""
    cin, cout = wt.shape[0], wt.shape[1]
    blocks = []
    for a in (0, 1):
        for c in (0, 1):
            w3 = jnp.zeros((cout, cin, 3, 3), wt.dtype)
            for dy in range(3):
                ky = _KMAP.get((a, dy))
                if ky is None:
                    continue
                for dx in range(3):
                    kx = _KMAP.get((c, dx))
                    if kx is None:
                        continue
                    w3 = w3.at[:, :, dy, dx].set(wt[:, :, ky, kx].T)
            blocks.append(w3)
    return jnp.concatenate(blocks, axis=0)


# ------------------------------------------------------------------
# Generator parameters
# ------------------------------------------------------------------

def _conv_w(key, cout, cin, k):
    return jax.random.normal(key, (cout, cin, k, k), jnp.float32) / jnp.sqrt(
        float(cin * k * k))


def init_generator_params(key):
    n_keys = len(DOWN_CH) + 2 * NUM_RES + len(UP_CH) + 1
    keys = iter(jax.random.split(key, n_keys))
    params = {"down": [], "res": [], "up": []}
    for cin, cout in DOWN_CH:
        params["down"].append({"w": _conv_w(next(keys), cout, cin, 4),
                               "b": jnp.zeros((cout,), jnp.float32),
                               "gamma": jnp.ones((cout,), jnp.float32),
                               "beta": jnp.zeros((cout,), jnp.float32)})
    for _ in range(NUM_RES):
        params["res"].append({"w1": _conv_w(next(keys), RES_CH, RES_CH, 3),
                              "b1": jnp.zeros((RES_CH,), jnp.float32),
                              "g1": jnp.ones((RES_CH,), jnp.float32),
                              "bt1": jnp.zeros((RES_CH,), jnp.float32),
                              "w2": _conv_w(next(keys), RES_CH, RES_CH, 3),
                              "b2": jnp.zeros((RES_CH,), jnp.float32),
                              "g2": jnp.ones((RES_CH,), jnp.float32),
                              "bt2": jnp.zeros((RES_CH,), jnp.float32)})
    for cin, cout in UP_CH:
        w = jax.random.normal(next(keys), (cin, cout, 4, 4), jnp.float32)
        params["up"].append({"w": w / jnp.sqrt(float(cin * 16)),
                             "b": jnp.zeros((cout,), jnp.float32),
                             "gamma": jnp.ones((cout,), jnp.float32),
                             "beta": jnp.zeros((cout,), jnp.float32)})
    params["final"] = {"w": _conv_w(next(keys), 3, 16, 3),
                       "b": jnp.zeros((3,), jnp.float32)}
    return params


def prepare_generator_params(params):
    """One-time conversion to GEMM-ready bf16 weights (no per-forward casts)."""
    def vec2(v):
        return v.astype(jnp.float32).reshape(1, -1)

    prep = {"down": [], "res": [], "up": []}
    for p in params["down"]:
        # TODO(synk): Cout=32/64 down layers still use sub-128-lane stores; a
        # lane-padded variant would require an extra slice pass before the IN.
        prep["down"].append({"wg": _to_gemm_weight(p["w"]),
                             "bias": _to_bias2(p["b"]),
                             "gamma2": vec2(p["gamma"]),
                             "beta2": vec2(p["beta"])})
    for p in params["res"]:
        prep["res"].append({"w1": _to_gemm_weight(p["w1"]), "bias1": _to_bias2(p["b1"]),
                            "g1": vec2(p["g1"]), "be1": vec2(p["bt1"]),
                            "w2": _to_gemm_weight(p["w2"]), "bias2": _to_bias2(p["b2"]),
                            "g2": vec2(p["g2"]), "be2": vec2(p["bt2"])})
    for p in params["up"]:
        cout = p["w"].shape[1]
        pad_to = 128 if 4 * cout < 128 else None       # lane-dense GEMM output
        wf = _fuse_convT_weight(p["w"])
        prep["up"].append({"wg": _to_gemm_weight(wf, pad_to=pad_to),
                           "bias": _to_bias2(jnp.tile(p["b"], 4), pad_to=pad_to),
                           "gamma2": vec2(p["gamma"]),
                           "beta2": vec2(p["beta"])})
    p = params["final"]
    prep["final"] = {"wg": _to_gemm_weight(p["w"], pad_to=128),
                     "bias": _to_bias2(p["b"], pad_to=128)}
    return prep


# ------------------------------------------------------------------
# Generator forward (NCHW in/out, NHWC + bf16 internally)
# ------------------------------------------------------------------

def generator_forward(x_nchw, prep):
    x = jnp.transpose(x_nchw, (0, 2, 3, 1)).astype(jnp.bfloat16)
    # ConvDownBlocks
    for p, (_, cout) in zip(prep["down"], DOWN_CH):
        x = conv2d(x, p["wg"], p["bias"], cout, 4, 4, stride=2, pad=1)
        x = instance_norm_act(x, p["gamma2"], p["beta2"], alpha=0.2)
    # ResidualBlocks (skip-add fused into the second InstanceNorm kernel)
    for p in prep["res"]:
        h = conv2d(x, p["w1"], p["bias1"], RES_CH, 3, 3, stride=1, pad=1)
        h = instance_norm_act(h, p["g1"], p["be1"], alpha=0.0)          # ReLU
        h = conv2d(h, p["w2"], p["bias2"], RES_CH, 3, 3, stride=1, pad=1)
        x = instance_norm_act(h, p["g2"], p["be2"], residual=x)         # IN + x
    # ConvUpBlocks (single-GEMM sub-pixel ConvTranspose)
    for p, (_, cout) in zip(prep["up"], UP_CH):
        x = conv_transpose2d(x, p["wg"], p["bias"], cout)
        x = instance_norm_act(x, p["gamma2"], p["beta2"], alpha=0.2)
    # final Conv2d(16, 3, 3, 1, 1) + Tanh (tanh fused in the GEMM epilogue;
    # output lanes padded to 128, sliced here)
    p = prep["final"]
    x = conv2d(x, p["wg"], p["bias"], 3, 3, 3, stride=1, pad=1, activation="tanh")
    return jnp.transpose(x, (0, 3, 1, 2)).astype(jnp.float32)


# ------------------------------------------------------------------
# XLA references for unit checks
# ------------------------------------------------------------------

def _conv_ref_nchw(x_nhwc, w_torch, b, stride, pad):
    y = lax.conv_general_dilated(
        jnp.transpose(x_nhwc, (0, 3, 1, 2)), w_torch,
        window_strides=(stride, stride), padding=((pad, pad), (pad, pad)),
        dimension_numbers=("NCHW", "OIHW", "NCHW"))
    return y + b[None, :, None, None]


def _convT_ref_nchw(x_nhwc, wt, b):
    # PyTorch ConvTranspose2d(4,2,1): dilate input by 2, pad by k-1-p=2,
    # convolve with the spatially flipped, transposed weight.
    w = jnp.transpose(wt, (1, 0, 2, 3))[:, :, ::-1, ::-1]
    y = lax.conv_general_dilated(
        jnp.transpose(x_nhwc, (0, 3, 1, 2)), w,
        window_strides=(1, 1), padding=((2, 2), (2, 2)), lhs_dilation=(2, 2),
        dimension_numbers=("NCHW", "OIHW", "NCHW"))
    return y + b[None, :, None, None]


if __name__ == "__main__":
    key = jax.random.PRNGKey(0)
    kx, kp, k1, k2, k3, k4, k5 = jax.random.split(key, 7)

    # ---- unit check 1: stride-2 4x4 conv (lane-padded N) vs XLA reference ----
    xc = jax.random.normal(k1, (2, 12, 12, 16), jnp.float32)
    wc = jax.random.normal(k2, (24, 16, 4, 4), jnp.float32) * 0.2
    bc = jax.random.normal(k3, (24,), jnp.float32) * 0.2
    xcb = xc.astype(jnp.bfloat16)
    got = conv2d(xcb, _to_gemm_weight(wc, pad_to=128), _to_bias2(bc, pad_to=128),
                 24, 4, 4, stride=2, pad=1)
    ref = _conv_ref_nchw(xcb.astype(jnp.float32),
                         wc.astype(jnp.bfloat16).astype(jnp.float32), bc, 2, 1)
    err = float(jnp.max(jnp.abs(jnp.transpose(got.astype(jnp.float32),
                                              (0, 3, 1, 2)) - ref)))
    tol = 1e-2 + 1e-2 * float(jnp.max(jnp.abs(ref)))
    assert err <= tol, f"conv2d mismatch: {err} > {tol}"

    # ---- unit check 2: fused sub-pixel ConvTranspose2d(4,2,1) vs XLA ----
    xt = jax.random.normal(k2, (2, 6, 6, 16), jnp.float32)
    wt = jax.random.normal(k3, (16, 8, 4, 4), jnp.float32) * 0.2
    bt = jax.random.normal(k4, (8,), jnp.float32) * 0.2
    xtb = xt.astype(jnp.bfloat16)
    wf = _fuse_convT_weight(wt)
    got = conv_transpose2d(xtb, _to_gemm_weight(wf, pad_to=128),
                           _to_bias2(jnp.tile(bt, 4), pad_to=128), 8)
    ref = _convT_ref_nchw(xtb.astype(jnp.float32),
                          wt.astype(jnp.bfloat16).astype(jnp.float32), bt)
    err = float(jnp.max(jnp.abs(jnp.transpose(got.astype(jnp.float32),
                                              (0, 3, 1, 2)) - ref)))
    tol = 1e-2 + 1e-2 * float(jnp.max(jnp.abs(ref)))
    assert err <= tol, f"conv_transpose2d mismatch: {err} > {tol}"

    # ---- unit check 3: HW-chunked two-pass InstanceNorm vs jnp reference ----
    xi = (jax.random.normal(k5, (2, 16, 16, 32), jnp.float32) * 2.0 + 0.5)
    xib = xi.astype(jnp.bfloat16)
    g1 = jnp.ones((1, 32), jnp.float32)
    b1 = jnp.zeros((1, 32), jnp.float32)
    got = instance_norm_act(xib, g1, b1, alpha=0.2, hw_chunk=64)   # force 4 chunks
    x32 = xib.astype(jnp.float32)
    mu = jnp.mean(x32, axis=(1, 2), keepdims=True)
    var = jnp.mean((x32 - mu) ** 2, axis=(1, 2), keepdims=True)
    refy = (x32 - mu) * lax.rsqrt(var + 1e-5)
    refy = jnp.maximum(refy, 0.2 * refy)
    err = float(jnp.max(jnp.abs(got.astype(jnp.float32) - refy)))
    assert err <= 5e-2, f"chunked instance_norm mismatch: {err}"

    # ---- full Generator forward ----
    # layer-consistent small shape: 4 stride-2 downsamples need spatial % 16 == 0
    x = jax.random.normal(kx, (2, 3, 32, 32), jnp.float32)
    raw = init_generator_params(kp)
    prep = prepare_generator_params(raw)

    fwd = jax.jit(generator_forward)
    y = jax.block_until_ready(fwd(x, prep))

    assert y.shape == (2, 3, 32, 32), y.shape
    assert y.dtype == jnp.float32
    assert bool(jnp.all(jnp.isfinite(y)))
    assert bool(jnp.all(jnp.abs(y) <= 1.0 + 1e-6))  # tanh range
    print("KERNEL_OK")
</pallas_src>

<mosaic_0001>
module attributes {stable_mosaic.version = 11 : i64} {
  func.func @_gemm_bias_kernel(%arg0: i32, %arg1: i32, %arg2: memref<72x256xbf16, #tpu.memory_space<vmem>>, %arg3: memref<256x128xbf16, #tpu.memory_space<vmem>>, %arg4: memref<1x128xf32, #tpu.memory_space<vmem>>, %arg5: memref<72x128xbf16, #tpu.memory_space<vmem>>) attributes {dimension_semantics = [#tpu.dimension_semantics<parallel>, #tpu.dimension_semantics<parallel>], iteration_bounds = array<i64: 1, 1>, scalar_prefetch = 0 : i64, scratch_operands = 0 : i64, tpu.core_type = #tpu.core_type<tc>, window_params = [{transform_indices = @transform_0, window_bounds = array<i64: 72, 256>}, {transform_indices = @transform_1, window_bounds = array<i64: 256, 128>}, {transform_indices = @transform_2, window_bounds = array<i64: 1, 128>}, {transform_indices = @transform_3, window_bounds = array<i64: 72, 128>}]} {
    %c0 = arith.constant 0 : index
    %c0_0 = arith.constant 0 : index
    %0 = vector.load %arg2[%c0, %c0_0] : memref<72x256xbf16, #tpu.memory_space<vmem>>, vector<72x256xbf16>
    %c0_1 = arith.constant 0 : index
    %c0_2 = arith.constant 0 : index
    %1 = vector.load %arg3[%c0_1, %c0_2] : memref<256x128xbf16, #tpu.memory_space<vmem>>, vector<256x128xbf16>
    %cst = arith.constant dense<0.000000e+00> : vector<72x128xf32>
    %2 = tpu.matmul %0, %1, %cst {dimension_numbers = #tpu.dot_dimension_numbers<[1], [0], [0], [1], [0, 0, 1, 1], [], []>} : vector<72x256xbf16>, vector<256x128xbf16>, vector<72x128xf32> -> vector<72x128xf32>
    %c0_3 = arith.constant 0 : index
    %c0_4 = arith.constant 0 : index
    %3 = vector.load %arg4[%c0_3, %c0_4] : memref<1x128xf32, #tpu.memory_space<vmem>>, vector<1x128xf32>
    %4 = vector.broadcast %3 : vector<1x128xf32> to vector<72x128xf32>
    %5 = arith.addf %2, %4 : vector<72x128xf32>
    %6 = arith.truncf %5 : vector<72x128xf32> to vector<72x128xbf16>
    %c0_5 = arith.constant 0 : index
    %c0_6 = arith.constant 0 : index
    %7 = vector.load %arg5[%c0_5, %c0_6] : memref<72x128xbf16, #tpu.memory_space<vmem>>, vector<72x128xbf16>
    tpu.vector_store %arg5[%c0_5, %c0_6], %6 {strides = array<i32>} : memref<72x128xbf16, #tpu.memory_space<vmem>>, vector<72x128xbf16>,
    return
  }
  func.func @transform_0(%arg0: i32, %arg1: i32) -> (i32, i32) {
    %c0_i32 = arith.constant 0 : i32
    %c0_i32_0 = arith.constant 0 : i32
    return %arg0, %c0_i32 : i32, i32
  }
  func.func @transform_1(%arg0: i32, %arg1: i32) -> (i32, i32) {
    %c0_i32 = arith.constant 0 : i32
    %c0_i32_0 = arith.constant 0 : i32
    return %c0_i32, %arg1 : i32, i32
  }
  func.func @transform_2(%arg0: i32, %arg1: i32) -> (i32, i32) {
    %c0_i32 = arith.constant 0 : i32
    %c0_i32_0 = arith.constant 0 : i32
    return %c0_i32, %arg1 : i32, i32
  }
  func.func @transform_3(%arg0: i32, %arg1: i32) -> (i32, i32) {
    %c0_i32 = arith.constant 0 : i32
    return %arg0, %arg1 : i32, i32
  }
}

</mosaic_0001>

<bundles_post_ra>
// kernel: tpu_custom_call.1
= control target key start
LH: loop header
LB: loop body
LE: loop exit
PB: predicated region body
PF: predicated region fallthrough
CT: control target
= control target key end

     0   :  { %8 = vsyncpa [#allocation3], 0  ;;  %s682_s0 = inlined_call_operand.hbm [shape: bf16[72,256], index: 0, kind: input, shape index: {}]   ;;  %s683_s1 = inlined_call_operand.hbm [shape: bf16[256,128], index: 1, kind: input, shape index: {}]   ;;  %s684_s2 = inlined_call_operand.vmem [shape: f32[1,128], index: 2, kind: input, shape index: {}]   ;;  %s685_s3 = inlined_call_operand.hbm [shape: bf16[72,128], index: 3, kind: output, shape index: {}]  }
   0x1   :  { %9 = vsyncpa [#allocation6], 0 }
   0x2   :  { %10 = vsyncpa [#allocation4], 0  ;;  %s610_s12 = smov [#allocation2]   ;;  %s538_s16 = scalar_lea.hbm %s682_s0, 1152 }
   0x3   :  { %s16_s13 = sshll.u32 %s610_s12, 4  ;;  %p539_p0 = scmp.ne.s32.totalorder %s682_s0, %s538_s16  ;;  %s17_s13 = int_to_ptr.vmem [resolvable:$true] %s16_s13 }
   0x4   :  { %p542_p1 = scmp.lt.u32.totalorder %s538_s16, %s682_s0 }
   0x6   :  { %p544_p2 = pnand %p542_p1, %p539_p0 }
   0x8   :  { %547 = shalt.err (!%p544_p2)
}
   0x9   :  { %s548_s21 = scalar_lea.vmem %s17_s13, 1152  ;;  %p553_p4 = scmp.lt.s32.totalorder %s17_s13, %s17_s13 }
   0xa   :  { %p549_p3 = scmp.ne.s32.totalorder %s17_s13, %s548_s21  ;;  %p554_p5 = scmp.lt.s32.totalorder %s548_s21, %s548_s21 }
   0xc   :  { %p555_p6 = por %p554_p5, %p553_p4 }
   0xe   :  { %p556_p7 = pnand %p555_p6, %p549_p3 }
  0x10   :  { %559 = shalt.err (!%p556_p7)
}
  0x11   :  { %s611_s22 = smov 128   ;;  %s612_s23 = smov 8  }
  0x12   :  { %22 = dma.hbm_to_vmem [thread:$0]  %s682_s0, 1152, %s17_s13, [#allocation3], %s611_s22, %s611_s22, %s612_s23  }
  0x13   :  { %s613_s26 = smov [#allocation5]   ;;  %s560_s30 = scalar_lea.hbm %s683_s1, 2048 }
  0x14   :  { %s28_s27 = sshll.u32 %s613_s26, 4  ;;  %p561_p8 = scmp.ne.s32.totalorder %s683_s1, %s560_s30  ;;  %s29_s27 = int_to_ptr.vmem [resolvable:$true] %s28_s27 }
  0x15   :  { %p564_p9 = scmp.lt.u32.totalorder %s560_s30, %s683_s1 }
  0x17   :  { %p566_p10 = pnand %p564_p9, %p561_p8 }
  0x19   :  { %569 = shalt.err (!%p566_p10)
}
  0x1a   :  { %s570_s8 = scalar_lea.vmem %s29_s27, 2048  ;;  %p575_p12 = scmp.lt.s32.totalorder %s29_s27, %s29_s27 }
  0x1b   :  { %p571_p11 = scmp.ne.s32.totalorder %s29_s27, %s570_s8  ;;  %p576_p13 = scmp.lt.s32.totalorder %s570_s8, %s570_s8 }
  0x1d   :  { %p577_p0 = por %p576_p13, %p575_p12 }
  0x1f   :  { %p578_p1 = pnand %p577_p0, %p571_p11 }
  0x21   :  { %581 = shalt.err (!%p578_p1)
}
  0x22   :  { %s614_s0 = smov 64   ;;  %s615_s9 = smov 4  }
  0x23   :  { %34 = dma.hbm_to_vmem [thread:$0]  %s683_s1, 2048, %s29_s27, [#allocation6], %s614_s0, %s614_s0, %s615_s9  }
  0x24   :  { %604 = dma.done.wait [#allocation3], 1152  }
  0x25   :  { %605 = vsyncadd [#allocation3], 4294966144 }
  0x26   :  { %606 = dma.done.wait [#allocation6], 2048  }
  0x27   :  { %607 = vsyncadd [#allocation6], 4294965248  ;;  %v508_v0 = vld [vmem:[#allocation5 + $0x40] sm:$0xff]   ;;  %v510_v2 = vld [vmem:[#allocation5 + $0x48] sm:$0xff]  }
  0x28   :  { %v509_v1 = vld [vmem:[#allocation5] sm:$0xff]   ;;  %439 = vmatprep.subr.bf16.mxu0 %v508_v0  ;;  %485 = vmatprep.subr.bf16.mxu1 %v508_v0  ;;  %v511_v3 = vld [vmem:[#allocation5 + $0x8] sm:$0xff]   ;;  %v512_v4 = vld [vmem:[#allocation5 + $0x50] sm:$0xff]  }
  0x29   :  { %440 = vmatpush3.bf16.msra.mxu0 %v509_v1  ;;  %493 = vmatpush3.bf16.msra.mxu1 %v509_v1  ;;  %v513_v5 = vld [vmem:[#allocation5 + $0x10] sm:$0xff]   ;;  %v514_v6 = vld [vmem:[#allocation5 + $0x58] sm:$0xff]   ;;  %v516_v8 = vld [vmem:[#allocation5 + $0x60] sm:$0xff]  }
  0x2a   :  { %441 = vmatprep.subr.bf16.mxu0 %v510_v2  ;;  %486 = vmatprep.subr.bf16.mxu1 %v510_v2  ;;  %v515_v7 = vld [vmem:[#allocation5 + $0x18] sm:$0xff]   ;;  %v517_v9 = vld [vmem:[#allocation5 + $0x20] sm:$0xff]   ;;  %v518_v10 = vld [vmem:[#allocation5 + $0x68] sm:$0xff]  }
  0x2b   :  { %v526_v11 = vld [vmem:[#allocation2 + $0x4] ss:$8 sps:$4 sm:$0xff]   ;;  %v529_v12 = vld [vmem:[#allocation2 + $0x34] ss:$8 sps:$4 sm:$0xff]   ;;  %v524_v19 = vld [vmem:[#allocation2] ss:$8 sps:$4 sm:$0xff]  }
  0x2c   :  { %v519_v13 = vld [vmem:[#allocation5 + $0x28] sm:$0xff]   ;;  %v520_v14 = vld [vmem:[#allocation5 + $0x70] sm:$0xff]   ;;  %267 = vmatprep.mubr.bf16.mxu0 %v526_v11  ;;  %291 = vmatprep.mubr.bf16.mxu1 %v529_v12  ;;  %v522_v16 = vld [vmem:[#allocation5 + $0x78] sm:$0xff]  }
  0x2d   :  { %442 = vmatpush3.bf16.msra.mxu0 %v511_v3  ;;  %494 = vmatpush3.bf16.msra.mxu1 %v511_v3  ;;  %v521_v15 = vld [vmem:[#allocation5 + $0x30] sm:$0xff]   ;;  %v523_v17 = vld [vmem:[#allocation5 + $0x38] sm:$0xff]  }
  0x2e   :  { %443 = vmatprep.subr.bf16.mxu0 %v512_v4  ;;  %487 = vmatprep.subr.bf16.mxu1 %v512_v4  ;;  %v52_v18 = vld [vmem:[#allocation2 + $0x40] sm:$0xff]  ;;  %v527_v20 = vld [vmem:[#allocation2 + $0x30] ss:$8 sps:$4 sm:$0xff]   ;;  %v530_v21 = vld [vmem:[#allocation2 + $0x14] ss:$8 sps:$4 sm:$0xff]  }
  0x2f   :  { %v381_v22 = vcombine.high %v52_v18, %v52_v18  ;;  %v532_v23 = vld [vmem:[#allocation2 + $0x10] ss:$8 sps:$4 sm:$0xff]   ;;  %v380_v24 = vcombine.low %v52_v18, %v52_v18  ;;  %v534_v25 = vld [vmem:[#allocation2 + $0x24] ss:$8 sps:$4 sm:$0xff]   ;;  %v537_v26 = vld [vmem:[#allocation2 + $0x20] ss:$8 sps:$4 sm:$0xff]  }
  0x30   :  { %v371_v35 = vld [vmem:[%s684_s2] ss:$0 sm:$0xff]  ;;  %s616_s2 = smov [#allocation7]  }
  0x31   :  { %444 = vmatpush3.bf16.msra.mxu0 %v513_v5  ;;  %495 = vmatpush3.bf16.msra.mxu1 %v513_v5  ;;  %s358_s13 = sshll.u32 %s616_s2, 4  ;;  %s359_s13 = int_to_ptr.vmem [resolvable:$true] %s358_s13 }
  0x32   :  { %445 = vmatprep.subr.bf16.mxu0 %v514_v6  ;;  %488 = vmatprep.subr.bf16.mxu1 %v514_v6  ;;  %s582_s14 = scalar_lea.vmem %s359_s13, 576  ;;  %p587_p3 = scmp.lt.s32.totalorder %s359_s13, %s359_s13 }
  0x33   :  { %p583_p2 = scmp.ne.s32.totalorder %s359_s13, %s582_s14  ;;  %p588_p4 = scmp.lt.s32.totalorder %s582_s14, %s582_s14 }
  0x35   :  { %446 = vmatpush3.bf16.msra.mxu0 %v515_v7  ;;  %496 = vmatpush3.bf16.msra.mxu1 %v515_v7  ;;  %p589_p5 = por %p588_p4, %p587_p3 }
  0x36   :  { %447 = vmatprep.subr.bf16.mxu0 %v516_v8  ;;  %489 = vmatprep.subr.bf16.mxu1 %v516_v8 }
  0x37   :  { %p590_p6 = pnand %p589_p5, %p583_p2 }
  0x39   :  { %448 = vmatpush3.bf16.msra.mxu0 %v517_v9  ;;  %497 = vmatpush3.bf16.msra.mxu1 %v517_v9 }
  0x3a   :  { %449 = vmatprep.subr.bf16.mxu0 %v518_v10  ;;  %490 = vmatprep.subr.bf16.mxu1 %v518_v10 }
  0x3d   :  { %450 = vmatpush3.bf16.msra.mxu0 %v519_v13  ;;  %498 = vmatpush3.bf16.msra.mxu1 %v519_v13 }
  0x3e   :  { %451 = vmatprep.subr.bf16.mxu0 %v520_v14  ;;  %491 = vmatprep.subr.bf16.mxu1 %v520_v14 }
  0x41   :  { %452 = vmatpush3.bf16.msra.mxu0 %v521_v15  ;;  %499 = vmatpush3.bf16.msra.mxu1 %v521_v15 }
  0x42   :  { %453 = vmatprep.subr.bf16.mxu0 %v522_v16  ;;  %492 = vmatprep.subr.bf16.mxu1 %v522_v16 }
  0x45   :  { %454 = vmatpush3.bf16.msra.mxu0 %v523_v17  ;;  %500 = vmatpush3.bf16.msra.mxu1 %v523_v17 }
  0x48   :  { %268 = vmatmul.mubr.bf16.vlgmr.msra.gmra.mrb[0].mxu0 %v524_v19  ;;  %292 = vmatmul.mubr.bf16.vlgmr.msra.gmra.mrb[0].mxu1 %v527_v20 }
  0x49   :  { %275 = vmatprep.mubr.bf16.mxu0 %v530_v21  ;;  %299 = vmatprep.mubr.bf16.mxu1 %v381_v22 }
  0x50   :  { %276 = vmatmul.mubr.bf16.gmra.mrb[4].mxu0 %v532_v23  ;;  %300 = vmatmul.mubr.bf16.gmra.mrb[4].mxu1 %v380_v24 }
  0x51   :  { %283 = vmatprep.mubr.bf16.mxu0 %v534_v25 }
  0x58   :  { %284 = vmatmul.mubr.bf16.gmra.mrb[8].mxu0 %v537_v26 }
 0x11b   :  { %v455_v27 = vpop.f32.mrb[0].mxu0  ;;  %v473_v28 = vpop.f32.mrb[0].mxu1 }
 0x11c   :  { %v456_v29 = vpop.f32.mrb[1].mxu0  ;;  %v474_v30 = vpop.f32.mrb[1].mxu1 }
 0x11d   :  { %v457_v31 = vadd.f32 %v456_v29, %v455_v27  ;;  %v458_v32 = vpop.f32.mrb[2].mxu0  ;;  %v475_v33 = vadd.f32 %v474_v30, %v473_v28  ;;  %v476_v34 = vpop.f32.mrb[2].mxu1 }
 0x11e   :  { %v459_v36 = vpop.f32.mrb[3].mxu0  ;;  %v477_v37 = vpop.f32.mrb[3].mxu1 }
 0x11f   :  { %v460_v38 = vadd.f32 %v459_v36, %v458_v32  ;;  %v294_v39 = vadd.f32 %v475_v33, %v371_v35  ;;  %v478_v40 = vadd.f32 %v477_v37, %v476_v34  ;;  %v270_v41 = vadd.f32 %v457_v31, %v371_v35 }
 0x121   :  { %v273_v42 = vadd.f32 %v460_v38, %v371_v35  ;;  %v297_v43 = vadd.f32 %v478_v40, %v371_v35 }
 0x123   :  { %v419_v44 = vpack.c.bf16 %v273_v42, %v270_v41  ;;  %v461_v45 = vpop.f32.mrb[4].mxu0  ;;  %v434_v46 = vpack.c.bf16 %v297_v43, %v294_v39  ;;  %v479_v47 = vpop.f32.mrb[4].mxu1 }
 0x124   :  { %v462_v48 = vpop.f32.mrb[5].mxu0  ;;  %v480_v49 = vpop.f32.mrb[5].mxu1 }
 0x125   :  { %420 = vst [vmem:[#allocation7] sm:$0xff] %v419_v44   ;;  %v463_v50 = vadd.f32 %v462_v48, %v461_v45  ;;  %v464_v51 = vpop.f32.mrb[6].mxu0  ;;  %438 = vst [vmem:[#allocation7 + $0x18] sm:$0xff] %v434_v46   ;;  %v481_v52 = vadd.f32 %v480_v49, %v479_v47  ;;  %v482_v53 = vpop.f32.mrb[6].mxu1 }
 0x126   :  { %v465_v54 = vpop.f32.mrb[7].mxu0  ;;  %v483_v55 = vpop.f32.mrb[7].mxu1 }
 0x127   :  { %v466_v56 = vadd.f32 %v465_v54, %v464_v51  ;;  %v302_v57 = vadd.f32 %v481_v52, %v371_v35  ;;  %v278_v58 = vadd.f32 %v463_v50, %v371_v35 }
 0x129   :  { %v281_v59 = vadd.f32 %v466_v56, %v371_v35  ;;  %v415_v60 = vpack.c.bf16 %v302_v57, %v302_v57 }
 0x12b   :  { %v424_v61 = vpack.c.bf16 %v281_v59, %v278_v58  ;;  %v467_v62 = vpop.f32.mrb[8].mxu0  ;;  %352 = vst [vmem:[#allocation7 + $0x20] sm:$0xf] %v415_v60 }
 0x12c   :  { %v468_v63 = vpop.f32.mrb[9].mxu0 }
 0x12d   :  { %436 = vst [vmem:[#allocation7 + $0x8] sm:$0xff] %v424_v61   ;;  %v469_v0 = vadd.f32 %v468_v63, %v467_v62  ;;  %v470_v1 = vpop.f32.mrb[10].mxu0 }
 0x12e   :  { %v471_v2 = vpop.f32.mrb[11].mxu0 }
 0x12f   :  { %v472_v3 = vadd.f32 %v471_v2, %v470_v1  ;;  %v286_v4 = vadd.f32 %v469_v0, %v371_v35 }
 0x131   :  { %v289_v5 = vadd.f32 %v472_v3, %v371_v35 }
 0x133   :  { %v429_v6 = vpack.c.bf16 %v289_v5, %v286_v4 }
 0x135   :  { %437 = vst [vmem:[#allocation7 + $0x10] sm:$0xff] %v429_v6  }
 0x136   :  { %593 = shalt.err (!%p590_p6)
}
 0x137   :  { %s594_s17 = scalar_lea.hbm %s685_s3, 576 }
 0x138   :  { %p595_p7 = scmp.ne.s32.totalorder %s685_s3, %s594_s17  ;;  %p598_p8 = scmp.lt.u32.totalorder %s594_s17, %s685_s3 }
 0x13a   :  { %p600_p9 = pnand %p598_p8, %p595_p7 }
 0x13c   :  { %603 = shalt.err (!%p600_p9)
}
 0x13d   :  { %364 = dma.vmem_to_hbm [thread:$0]  %s359_s13, 576, %s685_s3, [#allocation4], %s614_s0, %s614_s0, %s615_s9  }
 0x13e   :  { %608 = dma.done.wait [#allocation4], 576  }
 0x13f   :  { %609 = vsyncadd [#allocation4], 4294966720 }
 0x140   :  { %368 = vsyncpa [#allocation3], 1 }
 0x141   :  { %369 = vsyncpa [#allocation6], 1 }
 0x142   :  { %370 = vsyncpa [#allocation4], 1 }

</bundles_post_ra>
